<compile_context>
chip_gen: v7x
topology: tpu7x:2x2x1
jax: 0.10.0
libtpu: 0.0.40
codegen_flags: <defaults>
</compile_context>

<pallas_src>
import functools

import jax
import jax.numpy as jnp
from jax import lax
from jax.experimental import pallas as pl
from jax.experimental.pallas import tpu as pltpu


# ----------------------------- Pallas kernels -----------------------------

def _stats_kernel(x_ref, lab_ref, mu_ref, out_ref, acc_ref):
    # x_ref:   (1, C, TN)            raw pixels (channel-on-sublane, pixel-on-lane)
    # lab_ref: (1, 1, TN)  int32     segmentation labels (lane-dense)
    # mu_ref:  (1, C, 1)             global per-image channel mean
    # out_ref: (1, 1, K*(C+1), C+1)  per-class augmented gram (written once)
    # acc_ref: (K*(C+1), C+1)        VMEM scratch accumulator (single-buffered)
    n = pl.program_id(2)
    x = x_ref[0]                                            # (C, TN)
    lab = lab_ref[0]                                        # (1, TN)
    mu = mu_ref[0]                                          # (C, 1)
    c, tn = x.shape
    ca = c + 1
    k = acc_ref.shape[0] // ca

    xc = x - mu                                             # center in-kernel (VPU)
    x_aug = jnp.concatenate(                                # (C+1, TN)
        [xc, jnp.ones((1, tn), jnp.float32)], axis=0)
    # Per-class masked copies stacked along sublanes -> one large MXU matmul
    # instead of K small masked matmuls + separate count/sum reductions.
    xo = jnp.concatenate(
        [jnp.where(lab == kk, x_aug, 0.0) for kk in range(k)],
        axis=0)                                             # (K*(C+1), TN)
    g = lax.dot_general(xo, x_aug, (((1,), (1,)), ((), ())),
                        preferred_element_type=jnp.float32)  # (K*(C+1), C+1)

    @pl.when(n == 0)
    def _():
        acc_ref[...] = jnp.zeros_like(acc_ref)

    acc_ref[...] += g

    @pl.when(n == pl.num_programs(2) - 1)
    def _():
        out_ref[0, 0] = acc_ref[...]


def _filter_kernel(x_ref, lab_ref, w_ref, b_ref, o_ref):
    # x_ref:   (1, C, TN)   raw pixels
    # lab_ref: (1, 1, TN)   labels (lane-dense)
    # w_ref:   (1, K, C)    coef * Sigma^-1 p
    # b_ref:   (1, K, 1)    coef * mu_k^T Sigma^-1 p   (global mean folded in)
    # o_ref:   (1, 1, TN)   lane-dense output tile
    x = x_ref[0]                                            # (C, TN)
    lab = lab_ref[0]                                        # (1, TN)
    w = w_ref[0]                                            # (K, C)
    bias = b_ref[0]                                         # (K, 1)
    k = w.shape[0]
    tn = x.shape[1]

    scores = lax.dot_general(w, x, (((1,), (0,)), ((), ())),
                             preferred_element_type=jnp.float32)   # (K, TN) MXU
    class_ids = lax.broadcasted_iota(jnp.int32, (k, tn), 0)
    onehot = lab == class_ids                               # (K, TN) bool
    vals = jnp.where(onehot, scores - bias, 0.0)
    o_ref[0, 0, :] = jnp.sum(vals, axis=0)                  # lane-dense store


# --------------------------- kernel launch glue -----------------------------

@functools.lru_cache(maxsize=None)
def _vmem_limit_bytes():
    # Raise the scoped-VMEM budget on 128 MiB parts (v5e/v6e); keep headroom on
    # 64 MiB parts (v7x).
    try:
        cap = int(pltpu.get_tpu_info().vmem_capacity_bytes)
    except Exception:
        cap = 64 * 1024 * 1024
    return max(32 * 1024 * 1024, min(cap - 16 * 1024 * 1024, 96 * 1024 * 1024))


def _round_up(n, m):
    return ((n + m - 1) // m) * m


def _choose_tile(n_pad, rows_f32, budget_bytes=8 * 1024 * 1024):
    # Largest lane tile (multiple of 128) dividing the padded pixel axis whose
    # dominant per-tile f32 intermediates stay under budget_bytes.
    for t in (4096, 2048, 1024, 512, 256, 128):
        if n_pad % t == 0 and rows_f32 * t * 4 <= budget_bytes:
            return t
    return 128


def class_stats_pallas(x, labels_lane, gmean, num_classes, tn, nsplit):
    B, C, Np = x.shape
    K = num_classes
    M = K * (C + 1)
    steps = Np // tn
    spp = steps // nsplit
    return pl.pallas_call(
        _stats_kernel,
        out_shape=jax.ShapeDtypeStruct((nsplit, B, M, C + 1), jnp.float32),
        grid=(nsplit, B, spp),
        in_specs=[
            pl.BlockSpec((1, C, tn), lambda s, b, n: (b, 0, s * spp + n)),
            pl.BlockSpec((1, 1, tn), lambda s, b, n: (b, 0, s * spp + n)),
            pl.BlockSpec((1, C, 1), lambda s, b, n: (b, 0, 0)),
        ],
        out_specs=pl.BlockSpec((1, 1, M, C + 1), lambda s, b, n: (s, b, 0, 0)),
        scratch_shapes=[pltpu.VMEM((M, C + 1), jnp.float32)],
        compiler_params=pltpu.CompilerParams(
            dimension_semantics=("parallel", "parallel", "arbitrary"),
            vmem_limit_bytes=_vmem_limit_bytes()),
    )(x, labels_lane, gmean)


def matched_filter_pallas(x, labels_lane, w, bias, tn):
    B, C, Np = x.shape
    K = w.shape[1]
    return pl.pallas_call(
        _filter_kernel,
        out_shape=jax.ShapeDtypeStruct((B, 1, Np), jnp.float32),
        grid=(B, Np // tn),
        in_specs=[pl.BlockSpec((1, C, tn), lambda b, n: (b, 0, n)),
                  pl.BlockSpec((1, 1, tn), lambda b, n: (b, 0, n)),
                  pl.BlockSpec((1, K, C), lambda b, n: (b, 0, 0)),
                  pl.BlockSpec((1, K, 1), lambda b, n: (b, 0, 0))],
        out_specs=pl.BlockSpec((1, 1, tn), lambda b, n: (b, 0, n)),
        compiler_params=pltpu.CompilerParams(
            dimension_semantics=("parallel", "parallel"),
            vmem_limit_bytes=_vmem_limit_bytes()),
    )(x, labels_lane, w, bias)


# ------------------------------ JAX glue ------------------------------------

def _kmeans_labels(pixels, num_classes, iters=10):
    # TODO(synk): sklearn KMeans(random_state=0) (k-means++ init) has no exact
    # JAX/Pallas equivalent; deterministic Lloyd iterations with evenly strided
    # init are used for the segmentation mask.
    n = pixels.shape[0]
    stride = max(n // num_classes, 1)
    init = pixels[jnp.arange(num_classes) * stride]

    def assign(cent):
        # argmin ||x - c||^2 == argmin(||c||^2 - 2 x.c); matmul form, no NxKxC temp.
        c2 = jnp.sum(cent * cent, axis=1)
        d = c2[None, :] - 2.0 * (pixels @ cent.T)
        return jnp.argmin(d, axis=1)

    def step(cent, _):
        lab = assign(cent)
        # Segment-sum centroid update: no (N, K) float32 one-hot materialization.
        sums = jax.ops.segment_sum(pixels, lab, num_segments=num_classes)
        cnt = jax.ops.segment_sum(jnp.ones((n,), jnp.float32), lab,
                                  num_segments=num_classes)
        new = sums / jnp.maximum(cnt, 1.0)[:, None]
        new = jnp.where(cnt[:, None] > 0, new, cent)
        return new, None

    cent, _ = lax.scan(step, init, None, length=iters)
    return assign(cent).astype(jnp.int32)


def _per_class_filters(counts, sums, moms, gmean, pattern, min_class_size):
    # counts: (B,K)  sums/moms: per-class stats of the globally-centered pixels
    # gmean:  (B,C)  global per-image channel mean
    # Returns coef-folded weights / biases for the filter kernel on RAW x:
    #   w'    = coef * Sigma^-1 p
    #   bias' = coef * mu_k^T Sigma^-1 p   with mu_k the uncentered class mean
    B, K = counts.shape
    C = sums.shape[-1]
    cnt = jnp.maximum(counts, 1.0)
    mean_c = sums / cnt[..., None]                           # class mean (centered)
    cov = moms / cnt[..., None, None] - mean_c[..., :, None] * mean_c[..., None, :]
    cov = cov + 1e-6 * jnp.eye(C, dtype=jnp.float32)
    # TODO(synk): torch.inverse of the tiny (C,C) covariance has no Pallas
    # primitive; solve the small linear system in glue (more stable than inv).
    rhs = jnp.broadcast_to(pattern, (B, K, C))[..., None]
    w = jnp.linalg.solve(cov, rhs)[..., 0]                   # Sigma^-1 p  (B,K,C)
    denom = jnp.sqrt(jnp.maximum(jnp.einsum('c,bkc->bk', pattern, w), 1e-30))
    valid = counts >= float(min_class_size)
    coef = jnp.where(valid, 1.0 / denom, 0.0)
    mean_u = mean_c + gmean[:, None, :]                      # uncentered class mean
    bias = jnp.einsum('bkc,bkc->bk', mean_u, w)
    return w * coef[..., None], bias * coef


def spectral_linear_filter_parallel(hsi, methane_pattern, num_classes=20,
                                    min_class_size=10000,
                                    tn_stats=None, tn_filter=None, nsplit=None):
    """hsi: (B, C, H, W) float32, methane_pattern: (C,) -> (B, H, W) float32."""
    B, C, H, W = hsi.shape
    N = H * W
    K = num_classes
    x = hsi.reshape(B, C, N).astype(jnp.float32)             # channel-on-sublane
    pattern = jnp.asarray(methane_pattern, jnp.float32)

    # Segmentation glue (the only place that needs pixel-major data).
    pixels = jnp.transpose(x, (0, 2, 1))                      # (B, N, C)
    labels = jax.vmap(lambda p: _kmeans_labels(p, K))(pixels)  # (B, N) int32

    # Global per-image mean: subtracted *inside* the stats kernel (covariance is
    # shift invariant); centered x is never written to HBM.
    gmean = jnp.mean(x, axis=2, keepdims=True)                # (B, C, 1)

    # Pad the pixel axis to a multiple of 128 with a sentinel class so tiling
    # never falls back to a whole-axis block.
    n_pad = _round_up(N, 128)
    pad = n_pad - N
    x_pad = jnp.pad(x, ((0, 0), (0, 0), (0, pad))) if pad else x
    labels_pad = (jnp.pad(labels, ((0, 0), (0, pad)), constant_values=K)
                  if pad else labels)
    labels_lane = labels_pad.reshape(B, 1, n_pad).astype(jnp.int32)

    if tn_stats is None:
        tn_stats = _choose_tile(n_pad, K * (C + 1) + 4 * (C + 2))
    if tn_filter is None:
        tn_filter = _choose_tile(n_pad, C + K + 4)

    steps = n_pad // tn_stats
    if nsplit is None:                    # keep both v7x TensorCores busy at B==1
        nsplit = 2 if (B % 2 == 1 and steps % 2 == 0 and steps >= 2) else 1
    if steps % nsplit != 0:
        nsplit = 1

    aug = class_stats_pallas(x_pad, labels_lane, gmean, K, tn_stats, nsplit)
    aug = aug.sum(axis=0).reshape(B, K, C + 1, C + 1)
    counts = aug[:, :, C, C]                                  # (B, K)
    sums = aug[:, :, :C, C]                                   # (B, K, C)
    moms = aug[:, :, :C, :C]                                  # (B, K, C, C)

    w_s, bias_s = _per_class_filters(counts, sums, moms, gmean[:, :, 0],
                                     pattern, min_class_size)

    out = matched_filter_pallas(x_pad, labels_lane, w_s, bias_s[..., None],
                                tn_filter)                    # (B, 1, n_pad)
    return out[:, 0, :N].reshape(B, H, W)


# --------------------------- pure-JAX reference -----------------------------

def reference_forward(hsi, methane_pattern, num_classes, min_class_size):
    B, C, H, W = hsi.shape
    N = H * W
    x = hsi.reshape(B, C, N).astype(jnp.float32)
    xp = jnp.transpose(x, (0, 2, 1))                          # (B, N, C)
    pattern = jnp.asarray(methane_pattern, jnp.float32)
    labels = jax.vmap(lambda p: _kmeans_labels(p, num_classes))(xp)
    oh = jax.nn.one_hot(labels, num_classes, dtype=jnp.float32)
    g = jnp.mean(xp, axis=1, keepdims=True)                   # (B, 1, C)
    xc = xp - g
    counts = oh.sum(axis=1)
    sums = jnp.einsum('bnk,bnc->bkc', oh, xc)
    moms = jnp.einsum('bnk,bnc,bnd->bkcd', oh, xc, xc)
    w_s, bias_s = _per_class_filters(counts, sums, moms, g[:, 0, :],
                                     pattern, min_class_size)
    scores = jnp.einsum('bnc,bkc->bnk', xp, w_s) - bias_s[:, None, :]
    return jnp.sum(scores * oh, axis=-1).reshape(B, H, W)


# --------------------------------- main -------------------------------------

if __name__ == "__main__":
    key = jax.random.PRNGKey(0)
    k1, k2 = jax.random.split(key)

    B, C, H, W = 2, 4, 16, 16
    num_classes = 4
    min_class_size = 8          # module default 10000 would zero-out tiny images

    hsi = jax.random.normal(k1, (B, C, H, W), jnp.float32)
    methane_pattern = jax.random.normal(k2, (C,), jnp.float32)

    ref = jax.block_until_ready(
        reference_forward(hsi, methane_pattern, num_classes, min_class_size))

    out = spectral_linear_filter_parallel(hsi, methane_pattern,
                                          num_classes, min_class_size)
    out = jax.block_until_ready(out)
    assert out.shape == (B, H, W) and out.dtype == jnp.float32
    assert jnp.allclose(out, ref, atol=1e-2, rtol=1e-2), \
        float(jnp.max(jnp.abs(out - ref)))

    # Second run with small tiles to exercise the multi-step accumulation and
    # the split-reduction (nsplit=2) path on-device as well.
    out2 = spectral_linear_filter_parallel(hsi, methane_pattern,
                                           num_classes, min_class_size,
                                           tn_stats=128, tn_filter=128, nsplit=2)
    out2 = jax.block_until_ready(out2)
    assert jnp.allclose(out2, ref, atol=1e-2, rtol=1e-2), \
        float(jnp.max(jnp.abs(out2 - ref)))

    print("KERNEL_OK")
</pallas_src>

<mosaic_0001>
module attributes {stable_mosaic.version = 11 : i64} {
  func.func @_stats_kernel(%arg0: i32, %arg1: i32, %arg2: i32, %arg3: memref<1x4x256xf32, #tpu.memory_space<vmem>>, %arg4: memref<1x1x256xi32, #tpu.memory_space<vmem>>, %arg5: memref<1x4x1xf32, #tpu.memory_space<vmem>>, %arg6: memref<1x1x20x5xf32, #tpu.memory_space<vmem>>, %arg7: memref<20x5xf32, #tpu.memory_space<vmem>>) attributes {dimension_semantics = [#tpu.dimension_semantics<parallel>, #tpu.dimension_semantics<parallel>, #tpu.dimension_semantics<arbitrary>], iteration_bounds = array<i64: 1, 2, 1>, scalar_prefetch = 0 : i64, scratch_operands = 1 : i64, tpu.core_type = #tpu.core_type<tc>, window_params = [{transform_indices = @transform_0, window_bounds = array<i64: 1, 4, 256>}, {transform_indices = @transform_1, window_bounds = array<i64: 1, 1, 256>}, {transform_indices = @transform_2, window_bounds = array<i64: 1, 4, 1>}, {transform_indices = @transform_3, window_bounds = array<i64: 1, 1, 20, 5>}]} {
    %c0 = arith.constant 0 : index
    %c0_0 = arith.constant 0 : index
    %c0_1 = arith.constant 0 : index
    %0 = vector.load %arg3[%c0, %c0_0, %c0_1] : memref<1x4x256xf32, #tpu.memory_space<vmem>>, vector<1x4x256xf32>
    %1 = vector.shape_cast %0 : vector<1x4x256xf32> to vector<4x256xf32>
    %c0_2 = arith.constant 0 : index
    %c0_3 = arith.constant 0 : index
    %c0_4 = arith.constant 0 : index
    %2 = vector.load %arg4[%c0_2, %c0_3, %c0_4] : memref<1x1x256xi32, #tpu.memory_space<vmem>>, vector<1x1x256xi32>
    %3 = vector.shape_cast %2 : vector<1x1x256xi32> to vector<1x256xi32>
    %c0_5 = arith.constant 0 : index
    %c0_6 = arith.constant 0 : index
    %c0_7 = arith.constant 0 : index
    %4 = vector.load %arg5[%c0_5, %c0_6, %c0_7] : memref<1x4x1xf32, #tpu.memory_space<vmem>>, vector<1x4x1xf32>
    %5 = vector.shape_cast %4 : vector<1x4x1xf32> to vector<4x1xf32>
    %6 = vector.broadcast %5 : vector<4x1xf32> to vector<4x256xf32>
    %7 = arith.subf %1, %6 : vector<4x256xf32>
    %cst = arith.constant 1.000000e+00 : f32
    %8 = vector.broadcast %cst : f32 to vector<1x256xf32>
    %9 = tpu.concatenate %7, %8 in 0 : vector<4x256xf32>, vector<1x256xf32> -> vector<5x256xf32>
    %c0_i32 = arith.constant 0 : i32
    %10 = vector.broadcast %c0_i32 : i32 to vector<1x256xi32>
    %11 = arith.cmpi eq, %3, %10 : vector<1x256xi32>
    %cst_8 = arith.constant 0.000000e+00 : f32
    %12 = vector.shape_cast %11 : vector<1x256xi1> to vector<1x256xi1>
    %13 = vector.broadcast %12 : vector<1x256xi1> to vector<5x256xi1>
    %14 = vector.broadcast %cst_8 : f32 to vector<5x256xf32>
    %15 = arith.select %13, %9, %14 : vector<5x256xi1>, vector<5x256xf32>
    %c1_i32 = arith.constant 1 : i32
    %16 = vector.broadcast %c1_i32 : i32 to vector<1x256xi32>
    %17 = arith.cmpi eq, %3, %16 : vector<1x256xi32>
    %cst_9 = arith.constant 0.000000e+00 : f32
    %18 = vector.shape_cast %17 : vector<1x256xi1> to vector<1x256xi1>
    %19 = vector.broadcast %18 : vector<1x256xi1> to vector<5x256xi1>
    %20 = vector.broadcast %cst_9 : f32 to vector<5x256xf32>
    %21 = arith.select %19, %9, %20 : vector<5x256xi1>, vector<5x256xf32>
    %c2_i32 = arith.constant 2 : i32
    %22 = vector.broadcast %c2_i32 : i32 to vector<1x256xi32>
    %23 = arith.cmpi eq, %3, %22 : vector<1x256xi32>
    %cst_10 = arith.constant 0.000000e+00 : f32
    %24 = vector.shape_cast %23 : vector<1x256xi1> to vector<1x256xi1>
    %25 = vector.broadcast %24 : vector<1x256xi1> to vector<5x256xi1>
    %26 = vector.broadcast %cst_10 : f32 to vector<5x256xf32>
    %27 = arith.select %25, %9, %26 : vector<5x256xi1>, vector<5x256xf32>
    %c3_i32 = arith.constant 3 : i32
    %28 = vector.broadcast %c3_i32 : i32 to vector<1x256xi32>
    %29 = arith.cmpi eq, %3, %28 : vector<1x256xi32>
    %cst_11 = arith.constant 0.000000e+00 : f32
    %30 = vector.shape_cast %29 : vector<1x256xi1> to vector<1x256xi1>
    %31 = vector.broadcast %30 : vector<1x256xi1> to vector<5x256xi1>
    %32 = vector.broadcast %cst_11 : f32 to vector<5x256xf32>
    %33 = arith.select %31, %9, %32 : vector<5x256xi1>, vector<5x256xf32>
    %34 = tpu.concatenate %15, %21, %27, %33 in 0 : vector<5x256xf32>, vector<5x256xf32>, vector<5x256xf32>, vector<5x256xf32> -> vector<20x256xf32>
    %cst_12 = arith.constant dense<0.000000e+00> : vector<20x5xf32>
    %35 = tpu.matmul %34, %9, %cst_12 {dimension_numbers = #tpu.dot_dimension_numbers<[1], [1], [0], [0], [0, 0, 1, 0], [], []>} : vector<20x256xf32>, vector<5x256xf32>, vector<20x5xf32> -> vector<20x5xf32>
    %c0_i32_13 = arith.constant 0 : i32
    %36 = arith.cmpi eq, %arg2, %c0_i32_13 : i32
    %37 = arith.extui %36 : i1 to i32
    %c0_i32_14 = arith.constant 0 : i32
    %38 = arith.cmpi ne, %37, %c0_i32_14 : i32
    scf.if %38 {
      %cst_21 = arith.constant 0.000000e+00 : f32
      %45 = vector.broadcast %cst_21 : f32 to vector<20x5xf32>
      %c0_22 = arith.constant 0 : index
      %c0_23 = arith.constant 0 : index
      %46 = vector.load %arg7[%c0_22, %c0_23] : memref<20x5xf32, #tpu.memory_space<vmem>>, vector<20x5xf32>
      tpu.vector_store %arg7[%c0_22, %c0_23], %45 {strides = array<i32>} : memref<20x5xf32, #tpu.memory_space<vmem>>, vector<20x5xf32>,
    } else {
    }
    %c0_15 = arith.constant 0 : index
    %c0_16 = arith.constant 0 : index
    %39 = vector.load %arg7[%c0_15, %c0_16] : memref<20x5xf32, #tpu.memory_space<vmem>>, vector<20x5xf32>
    %40 = arith.addf %39, %35 : vector<20x5xf32>
    %c0_17 = arith.constant 0 : index
    %c0_18 = arith.constant 0 : index
    %41 = vector.load %arg7[%c0_17, %c0_18] : memref<20x5xf32, #tpu.memory_space<vmem>>, vector<20x5xf32>
    tpu.vector_store %arg7[%c0_17, %c0_18], %40 {strides = array<i32>} : memref<20x5xf32, #tpu.memory_space<vmem>>, vector<20x5xf32>,
    %c0_i32_19 = arith.constant 0 : i32
    %42 = arith.cmpi eq, %arg2, %c0_i32_19 : i32
    %43 = arith.extui %42 : i1 to i32
    %c0_i32_20 = arith.constant 0 : i32
    %44 = arith.cmpi ne, %43, %c0_i32_20 : i32
    scf.if %44 {
      %c0_21 = arith.constant 0 : index
      %c0_22 = arith.constant 0 : index
      %45 = vector.load %arg7[%c0_21, %c0_22] : memref<20x5xf32, #tpu.memory_space<vmem>>, vector<20x5xf32>
      %c0_23 = arith.constant 0 : index
      %c0_24 = arith.constant 0 : index
      %c0_25 = arith.constant 0 : index
      %c0_26 = arith.constant 0 : index
      %46 = vector.load %arg6[%c0_23, %c0_24, %c0_25, %c0_26] : memref<1x1x20x5xf32, #tpu.memory_space<vmem>>, vector<1x1x20x5xf32>
      %47 = vector.shape_cast %46 : vector<1x1x20x5xf32> to vector<20x5xf32>
      %48 = vector.shape_cast %45 : vector<20x5xf32> to vector<1x1x20x5xf32>
      tpu.vector_store %arg6[%c0_23, %c0_24, %c0_25, %c0_26], %48 {strides = array<i32>} : memref<1x1x20x5xf32, #tpu.memory_space<vmem>>, vector<1x1x20x5xf32>,
    } else {
    }
    return
  }
  func.func @transform_0(%arg0: i32, %arg1: i32, %arg2: i32) -> (i32, i32, i32) {
    %c1_i32 = arith.constant 1 : i32
    %0 = arith.muli %arg0, %c1_i32 : i32
    %1 = arith.addi %0, %arg2 : i32
    %c0_i32 = arith.constant 0 : i32
    %c0_i32_0 = arith.constant 0 : i32
    return %arg1, %c0_i32, %1 : i32, i32, i32
  }
  func.func @transform_1(%arg0: i32, %arg1: i32, %arg2: i32) -> (i32, i32, i32) {
    %c1_i32 = arith.constant 1 : i32
    %0 = arith.muli %arg0, %c1_i32 : i32
    %1 = arith.addi %0, %arg2 : i32
    %c0_i32 = arith.constant 0 : i32
    %c0_i32_0 = arith.constant 0 : i32
    return %arg1, %c0_i32, %1 : i32, i32, i32
  }
  func.func @transform_2(%arg0: i32, %arg1: i32, %arg2: i32) -> (i32, i32, i32) {
    %c0_i32 = arith.constant 0 : i32
    %c0_i32_0 = arith.constant 0 : i32
    %c0_i32_1 = arith.constant 0 : i32
    return %arg1, %c0_i32, %c0_i32_0 : i32, i32, i32
  }
  func.func @transform_3(%arg0: i32, %arg1: i32, %arg2: i32) -> (i32, i32, i32, i32) {
    %c0_i32 = arith.constant 0 : i32
    %c0_i32_0 = arith.constant 0 : i32
    %c0_i32_1 = arith.constant 0 : i32
    return %arg0, %arg1, %c0_i32, %c0_i32_0 : i32, i32, i32, i32
  }
}

</mosaic_0001>

<bundles_post_ra>
// kernel: tpu_custom_call.1
= control target key start
LH: loop header
LB: loop body
LE: loop exit
PB: predicated region body
PF: predicated region fallthrough
CT: control target
= control target key end

     0   :  { %8 = vsyncpa [#allocation4], 0  ;;  %s1016_s0 = inlined_call_operand.hbm [shape: f32[2,4,256], index: 0, kind: input, shape index: {}]   ;;  %s1017_s1 = inlined_call_operand.vmem [shape: s32[2,1,256], index: 1, kind: input, shape index: {}]   ;;  %s1018_s2 = inlined_call_operand.vmem [shape: f32[2,4,1], index: 2, kind: input, shape index: {}]   ;;  %s1019_s3 = inlined_call_operand.vmem [shape: f32[1,2,20,5], index: 3, kind: output, shape index: {}]  }
   0x1   :  { %10 = vsyncpa [#allocation4 + $0x1], 0  ;;  %s810_s12 = smov 0   ;;  %s812_s13 = smov 0  }
   0x2   :  { %s814_s14 = smov 0   ;;  %s816_s15 = smov 0  }
   0x3   :  { %s818_s16 = smov 0   ;;  %s820_s17 = smov 0  }
   0x4 LB: > { %s627_s18 = sadd.s32 4294967295, %s784_s17   ;;  %s31_s19 = sadd.s32 1, %s780_s16  ;;  %s784_s17 = sphi %s820_s17, %s16_s17   ;;  %s780_s16 = sphi %s818_s16, %s1045_s16   ;;  %s776_s15 = sphi %s816_s15, %s1044_s15   ;;  %s772_s14 = sphi %s814_s14, %s1043_s14   ;;  %s768_s13 = sphi %s812_s13, %s1042_s13   ;;  %s764_s12 = sphi %s810_s12, %s1041_s12  }
   0x5   : > { %p33_p0 = scmp.ge.s32.totalorder %s31_s19, 2  ;;  %s46_s20 = sadd.s32 1, %s772_s14 }
   0x6   : > { %p53_p1 = scmp.ne.s32.totalorder %s772_s14, %s768_s13  ;;  %p54_p2 = scmp.eq.s32.totalorder %s784_s17, 0 }
   0x7   : > { %s1047_s19 = smov (%p33_p0, %s31_s19), 0  ;;  %p59_p4 = scmp.ne.s32.totalorder %s768_s13, %s764_s12 }
   0x8   : > { %p846_p3 = por %p54_p2, %p53_p1  ;;  %s41_s22 = ssub.s32 %s780_s16, %s1047_s19 }
   0x9   : > { %p60_p5 = scmp.eq.s32.totalorder %s627_s18, 0  ;;  %p44_p6 = scmp.eq.s32.totalorder %s41_s22, 0 }
   0xa   : > { %p651_p8 = scmp.lt.s32.totalorder %s784_s17, 2  ;;  %s167_s25 = sand.u32 1, %s772_s14  }
   0xb   : > { %p853_p7 = por %p60_p5, %p59_p4  ;;  %s641_s26 = sshll.u32 %s780_s16, 7 }
   0xc   : > { %s859_s24 = scalar_select %p44_p6, %s772_s14, %s46_s20  }
   0xd   : > { %s631_s27 = sshll.u32 %s167_s25, 3  ;;  %s866_s30 = scalar_lea.hbm %s1016_s0, %s641_s26 }
   0xe   : > { %s171_s4 = scalar_lea.vmem [#allocation3], %s631_s27  ;;  %p870_p9 = pnand %p651_p8, %p846_p3 }
   0xf   : > { %s182_s5 = sshll.u32 %s171_s4, 4  ;;  %s168_s7 = scalar_lea.sflag [#allocation4], %s167_s25  ;;  %s874_s5 = int_to_ptr.vmem [resolvable:$true] %s182_s5 }
  0x10   : > { %s704_s8 = scalar_lea.hbm %s866_s30, 128  ;;  %p706_p13 = pneg %p870_p9 }
  0x11   : > { %p705_p12 = scmp.ne.s32.totalorder %s866_s30, %s704_s8  ;;  %s709_s11 = scalar_lea.hbm %s1016_s0, 256 }
  0x12   : > { %p710_p2 = scmp.lt.u32.totalorder %s866_s30, %s1016_s0  ;;  %p711_p3 = scmp.lt.u32.totalorder %s709_s11, %s704_s8 }
  0x13   : > { %p707_p0 = pnand %p706_p13, %p705_p12  ;;  %p713_p5 = scmp.lt.u32.totalorder %s704_s8, %s866_s30 }
  0x14   : > { %p712_p4 = por %p711_p3, %p710_p2 }
  0x15   : > { %p708_p1 = pneg %p707_p0 }
  0x16   : > { %p714_p6 = por %p713_p5, %p712_p4 }
  0x18   : > { %p715_p8 = pnand %p714_p6, %p708_p1 }
  0x1a   : > { %718 = shalt.err (!%p715_p8)
}
  0x1b   : > { %s719_s20 = scalar_lea.vmem %s874_s5, 128  ;;  %s786_s21 = smov [#allocation3]  }
  0x1c   : > { %p720_p12 = scmp.ne.s32.totalorder %s874_s5, %s719_s20  ;;  %s724_s22 = sshll.u32 %s786_s21, 4  ;;  %s725_s22 = int_to_ptr.vmem [resolvable:$false] %s724_s22 }
  0x1d   : > { %s726_s25 = scalar_lea.vmem %s725_s22, 256  ;;  %p727_p11 = scmp.lt.s32.totalorder %s874_s5, %s725_s22 }
  0x1e   : > { %p722_p0 = pnand %p720_p12, %p706_p13  ;;  %p728_p2 = scmp.lt.s32.totalorder %s726_s25, %s719_s20 }
  0x20   : > { %p723_p10 = pneg %p722_p0  ;;  %p729_p3 = por %p728_p2, %p727_p11 }
  0x22   : > { %p730_p4 = pnand %p729_p3, %p723_p10 }
  0x24   : > { %733 = shalt.err (!%p730_p4)
}
  0x25   : > { %650 = dma.hbm_to_vmem [thread:$0]  (!%p870_p9), %s866_s30, 128, %s874_s5, %s168_s7  }
  0x26   : > { %p1023_p1 = scmp.lt.s32.totalorder %s784_s17, 3  ;;  %p1024_p5 = scmp.ge.s32.totalorder %s784_s17, 1 }
  0x28   : > { %p209_p13 = pnand %p1024_p5, %p1023_p1 }
  0x29   : > { %s214_s26 = sand.u32 (!%p209_p13), 1, %s768_s13  }
  0x2a   : > { %212 = sbr.rel (%p209_p13) target bundleno = 424 (0x1a8), region = 32  ;;  %s908_s27 = sshll.u32 (!%p209_p13), %s214_s26, 3 }
  0x2b   : > { %s215_s28 = scalar_lea.sflag (!%p209_p13), [#allocation4], %s214_s26  ;;  %s218_s29 = scalar_lea.vmem (!%p209_p13), [#allocation3], %s908_s27 }
  0x31   : > { %759 = dma.done.wait (%p853_p7), %s215_s28, 128  }
  0x32   : > { %761 = vsyncadd (%p853_p7), %s215_s28, 4294967168  ;;  %p262_p9 = scmp.lt.s32.totalorder %s776_s15, 1  ;;  %v787_v0 = vmov 0   ;;  %v294_v7 = vlaneseq  ;;  %v788_v8 = vmov 839922192   ;;  %v284_v20 = vld [vmem:[%s218_s29] sm:$0xff] }
  0x33   : > { %703 = vset.pattern.permute.xlu0 %v787_v0  ;;  %v292_v9 = vunpack.c.l.s4 %v788_v8  ;;  %vm303_vm4 = vcmask 1043456   ;;  %vm380_vm11 = vcmask 1044480   ;;  %vm383_vm14 = vcmask 1041408  }
  0x34   : > { %s1049_s15 = smov (!%p262_p9, %s776_s15), 1  ;;  %v295_v10 = vshrl.u32 %v294_v7, 7  ;;  %vm386_vm15 = vcmask 1046528   ;;  %v789_v58 = vmov 0.0  }
  0x35   : > { %s637_s30 = sshll.u32 %s1049_s15, 2  ;;  %s636_s7 = sshll.u32 %s1049_s15, 1  ;;  %v293_v11 = vunpack.c.0.s8 %v292_v9 }
  0x36   : > { %s274_s6 = scalar_lea.vmem %s1018_s2, %s637_s30  ;;  %s268_s23 = scalar_lea.vmem %s1017_s1, %s636_s7  ;;  %v310_v12 = vsub.s32 0, %v295_v10  ;;  %v314_v13 = vsub.s32 1, %v295_v10 }
  0x37   : > { %v286_v1 = vld [vmem:[%s274_s6] sm:$0xf]  ;;  %v296_v14 = vsub.s32 %v293_v11, %v295_v10  ;;  %s644_s10 = smul.u32 24, %s1049_s15 }
  0x38   : > { %v285_v2 = vld [vmem:[%s268_s23] sm:$0x3]  ;;  %289 = vperm.xlu0 %703, %v286_v1  }
  0x39   : > { %vm306_vm0 = vcmp.eq.s32.totalorder %v285_v2, 0  ;;  %vm320_vm1 = vcmp.eq.s32.totalorder %v285_v2, 1  ;;  %vm334_vm2 = vcmp.eq.s32.totalorder %v285_v2, 2  ;;  %vm348_vm3 = vcmp.eq.s32.totalorder %v285_v2, 3  ;;  %s283_s18 = scalar_lea.vmem %s1019_s3, %s644_s10 }
  0x3a   : > { %v307_v3 = vsel %vm306_vm0, 1, %v787_v0  ;;  %v321_v4 = vsel %vm320_vm1, 1, %v787_v0  ;;  %v335_v5 = vsel %vm334_vm2, 1, %v787_v0  ;;  %v349_v6 = vsel %vm348_vm3, 1, %v787_v0 }
  0x3b   : > { %v311_v15 = vrot.slane %v307_v3, %v310_v12  ;;  %v325_v16 = vrot.slane %v321_v4, %v310_v12  ;;  %v339_v17 = vrot.slane %v335_v5, %v310_v12  ;;  %v353_v18 = vrot.slane %v349_v6, %v310_v12 }
  0x3c   : > { %v315_v21 = vrot.slane %v307_v3, %v314_v13  ;;  %v329_v22 = vrot.slane %v321_v4, %v314_v13  ;;  %v343_v23 = vrot.slane %v335_v5, %v314_v13  ;;  %v357_v25 = vrot.slane %v349_v6, %v314_v13 }
  0x3d   : > { %vm929_vm5 = vcmp.eq.s32.totalorder %v311_v15, 1  ;;  %vm933_vm6 = vcmp.eq.s32.totalorder %v325_v16, 1  ;;  %vm937_vm7 = vcmp.eq.s32.totalorder %v339_v17, 1  ;;  %vm941_vm8 = vcmp.eq.s32.totalorder %v353_v18, 1 }
  0x3e   : > { %vm945_vm9 = vcmp.eq.s32.totalorder %v315_v21, 1  ;;  %vm949_vm10 = vcmp.eq.s32.totalorder %v329_v22, 1  ;;  %vm953_vm12 = vcmp.eq.s32.totalorder %v343_v23, 1  ;;  %vm958_vm13 = vcmp.eq.s32.totalorder %v357_v25, 1 }
  0x3f   : > { %vm473_vm0 = vcmask 39936   ;;  %vm476_vm1 = vcmask 35840  }
  0x40   : > { %474 = vst.msk [vmem:[#allocation2] sm:$0xff] %vm473_vm0, %v789_v58  ;;  %475 = vst.msk [vmem:[#allocation2 + $0x8] sm:$0xff] %vm473_vm0, %v789_v58 }
  0x41   : > { %477 = vst.msk [vmem:[#allocation2 + $0x10] sm:$0xf] %vm476_vm1, %v789_v58 }
  0x47   : > { %v478_v59 = vld [vmem:[#allocation2] sm:$0xff]  ;;  %v479_v60 = vld [vmem:[#allocation2 + $0x8] sm:$0xff] }
  0x48   : > { %v480_v3 = vld [vmem:[#allocation2 + $0x10] sm:$0xf] }
  0xb7   : > { %v290_v19 = vpop.permute.xlu0 %289 }
  0xb8   : > { %v297_v24 = vrot.slane %v290_v19, %v296_v14 }
  0xba   : > { %v299_v27 = vsub.f32 %v284_v20, %v297_v24 }
  0xbc   : > { %v301_v34 = vcombine.high %v299_v27, %v299_v27  ;;  %v304_v35 = vsel %vm303_vm4, %v299_v27, 1.0 }
  0xbd   : > { %v332_v37 = vsel %vm933_vm6, %v304_v35, 0.0  ;;  %v346_v38 = vsel %vm937_vm7, %v304_v35, 0.0  ;;  %v360_v39 = vsel %vm941_vm8, %v304_v35, 0.0  ;;  %v318_v45 = vsel %vm929_vm5, %v304_v35, 0.0 }
  0xbe   : > { %v305_v40 = vsel %vm303_vm4, %v301_v34, 1.0  ;;  %v364_v41 = vrot.slane %v332_v37, 3  ;;  %v370_v42 = vrot.slane %v346_v38, 6  ;;  %v376_v43 = vrot.slane %v360_v39, 1 }
  0xbf   : > { %389 = vmatprep.subr.mxu0 %v305_v40  ;;  %642 = vmatprep.subr.mxu1 %v305_v40  ;;  %v333_v44 = vsel %vm949_vm10, %v305_v40, 0.0  ;;  %v347_v46 = vsel %vm953_vm12, %v305_v40, 0.0  ;;  %v361_v47 = vsel %vm958_vm13, %v305_v40, 0.0  ;;  %v319_v52 = vsel %vm945_vm9, %v305_v40, 0.0 }
  0xc0   : > { %390 = vmatpush1.xpose.msra.mxu0 %v304_v35  ;;  %643 = vmatpush1.xpose.msra.mxu1 %v304_v35  ;;  %v365_v48 = vrot.slane %v333_v44, 3  ;;  %v381_v49 = vsel %vm380_vm11, %v318_v45, %v364_v41  ;;  %v371_v50 = vrot.slane %v347_v46, 6  ;;  %v377_v51 = vrot.slane %v361_v47, 1 }
  0xc1   : > { %v384_v53 = vsel %vm383_vm14, %v364_v41, %v370_v42 }
  0xc2   : > { %v382_v54 = vsel %vm380_vm11, %v319_v52, %v365_v48  ;;  %v385_v55 = vsel %vm383_vm14, %v365_v48, %v371_v50  ;;  %v387_v56 = vsel %vm386_vm15, %v384_v53, %v376_v43 }
  0xc3   : > { %453 = vmatprep.mubr.f32.mxu0 %v382_v54  ;;  %v388_v57 = vsel %vm386_vm15, %v385_v55, %v377_v51 }
  0xc4   : > { %454 = vmatmul.mubr.f32.vlgmr.msra.gmra.mrb[0].mxu0 %v381_v49  ;;  %458 = vmatprep.mubr.f32.mxu1 %v388_v57 }
  0xc5   : > { %459 = vmatmul.mubr.f32.vlgmr.msra.gmra.mrb[0].mxu1 %v387_v56 }
  0xc6   : > { %463 = vmatprep.mubr.f32.mxu1 %v377_v51 }
  0xc9   : > { %464 = vmatmul.mubr.f32.gmra.mrb[2].mxu1 %v376_v43 }
 0x197   : > { %v455_v61 = vpop.f32.mrb[0].mxu0 }
 0x198   : > { %v481_v62 = vadd.f32 %v478_v59, %v455_v61  ;;  %v457_v63 = vpop.f32.mrb[1].mxu0  ;;  %v460_v0 = vpop.f32.mrb[0].mxu1 }
 0x199   : > { %v482_v1 = vadd.f32 %v479_v60, %v460_v0  ;;  %v462_v2 = vpop.f32.mrb[1].mxu1 }
 0x19a   : > { %485 = vst.msk [vmem:[#allocation2] sm:$0xff] %vm473_vm0, %v481_v62 }
 0x19b   : > { %486 = vst.msk [vmem:[#allocation2 + $0x8] sm:$0xff] %vm473_vm0, %v482_v1 }
 0x19c   : > { %v465_v4 = vpop.f32.mrb[2].mxu1 }
 0x19d   : > { %v483_v5 = vadd.f32 %v480_v3, %v465_v4  ;;  %v467_v6 = vpop.f32.mrb[3].mxu1 }
 0x19f   : > { %488 = vst.msk [vmem:[#allocation2 + $0x10] sm:$0xf] %vm476_vm1, %v483_v5 }
 0x1a1   : > { %v492_v7 = vld [vmem:[#allocation2] sm:$0xff] }
 0x1a2   : > { %495 = vst.msk [vmem:[%s283_s18] sm:$0xff] %vm473_vm0, %v492_v7  ;;  %v493_v8 = vld [vmem:[#allocation2 + $0x8] sm:$0xff] }
 0x1a3   : > { %496 = vst.msk [vmem:[%s283_s18 + $0x8] sm:$0xff] %vm473_vm0, %v493_v8 }
 0x1a6   : > { %v494_v9 = vld [vmem:[#allocation2 + $0x10] sm:$0xf] }
 0x1a7   : > { %497 = vst.msk [vmem:[%s283_s18 + $0x10] sm:$0xf] %vm476_vm1, %v494_v9 }
 0x1a8 PF: > { %s16_s17 = sadd.s32 1, %s784_s17   ;;  %s1041_s12 = smov %s768_s13 }
 0x1a9   : > { %p13_p7 = scmp.ge.s32.totalorder %s16_s17, 4   ;;  %s1042_s13 = smov %s772_s14 }
 0x1aa   : > { %s1043_s14 = smov %s859_s24  ;;  %s1044_s15 = smov %s780_s16 }
 0x1ab   : > { %s1045_s16 = smov %s1047_s19  ;;  %15 = sbr.rel (!%p13_p7) target bundleno = 4 (0x4), region = 86 }
 0x1b2   :  { %527 = vsyncpa [#allocation4], 1 }
 0x1b3   :  { %529 = vsyncpa [#allocation4 + $0x1], 1 }

</bundles_post_ra>
